<compile_context>
chip_gen: v5e
topology: v5e:2x2
jax: 0.10.0
libtpu: 0.0.40
codegen_flags: <defaults>
</compile_context>

<pallas_src>
import functools

import jax
import jax.numpy as jnp
from jax.experimental import pallas as pl
from jax.experimental.pallas import tpu as pltpu

_MIB = 1024 * 1024


# ---------------------------------------------------------------------------
# Kernels
# ---------------------------------------------------------------------------

def _mlp_streamed_kernel(x_ref, w1_ref, w2_ref, o_ref, acc_ref):
    # x_ref  : (TM, D)   token tile (compute dtype, e.g. bf16)
    # w1_ref : (D,  TH)  c_fc slice, [in, out] layout
    # w2_ref : (TH, D)   c_proj slice, [in, out] layout
    # o_ref  : (TM, D)   output tile
    # acc_ref: (TM, D)   f32 accumulator, resident across the H grid axis
    h_idx = pl.program_id(1)

    @pl.when(h_idx == 0)
    def _():
        acc_ref[...] = jnp.zeros_like(acc_ref)

    # c_fc slice: (TM, D) @ (D, TH), f32 accumulation on the MXU
    h = jnp.dot(x_ref[...], w1_ref[...], preferred_element_type=jnp.float32)
    # relu(x)^2 in f32 on the VPU
    h = jnp.maximum(h, 0.0)
    h = h * h
    # c_proj partial: (TM, TH) @ (TH, D), accumulate in f32
    acc_ref[...] += jnp.dot(h.astype(w2_ref.dtype), w2_ref[...],
                            preferred_element_type=jnp.float32)

    @pl.when(h_idx == pl.num_programs(1) - 1)
    def _():
        o_ref[...] = acc_ref[...].astype(o_ref.dtype)


def _mlp_resident_kernel(x_ref, w1_ref, w2_ref, o_ref):
    # Weights fully VMEM-resident; 1-D grid over token tiles only.
    h = jnp.dot(x_ref[...], w1_ref[...], preferred_element_type=jnp.float32)
    h = jnp.maximum(h, 0.0)
    h = h * h
    o_ref[...] = jnp.dot(h.astype(w2_ref.dtype), w2_ref[...],
                         preferred_element_type=jnp.float32).astype(o_ref.dtype)


# ---------------------------------------------------------------------------
# Config helpers
# ---------------------------------------------------------------------------

@functools.lru_cache(maxsize=1)
def _vmem_capacity_bytes():
    try:
        return int(pltpu.get_tpu_info().vmem_capacity_bytes)
    except Exception:
        return 64 * _MIB  # conservative default: v7x per-TensorCore VMEM


def _vmem_memory_space():
    ms = getattr(pltpu, "MemorySpace", None)
    if ms is None:  # older jax naming
        ms = pltpu.TPUMemorySpace
    return ms.VMEM


def _round_up(x, m):
    return ((x + m - 1) // m) * m


def _pick_tm(n_tokens, target):
    """Token tile: multiple of 16 (bf16 sublane packing), <= padded N, capped so
    the parallel token axis gets >= 2 tiles when there is enough work."""
    n16 = _round_up(max(n_tokens, 16), 16)
    tm = max(16, (min(target, n16) // 16) * 16)
    if n16 >= 768 and n16 < 2 * tm:
        tm = max(256, ((n16 // 2) // 256) * 256)
    return tm


def _pick_th(H, target):
    """Hidden tile: a multiple of 128 that divides H, else full H."""
    th = min(target, H)
    if th >= 128:
        th = (th // 128) * 128
        while th >= 128 and H % th != 0:
            th -= 128
        if th >= 128:
            return th
    return H


def _streamed_vmem_bytes(tm, th, D, x_it, w_it, out_it):
    return (2 * tm * D * x_it                 # x tile, double-buffered
            + 2 * (D * th + th * D) * w_it    # w1/w2 slices, double-buffered
            + tm * D * 4                      # f32 accumulator scratch
            + 2 * tm * D * out_it             # out tile, double-buffered
            + tm * th * (4 + w_it))           # (tm, th) hidden f32 + cast copy


def _resident_vmem_bytes(tm, D, H, x_it, w_it, out_it):
    return (2 * D * H * w_it                  # W1 + W2, single-buffered in VMEM
            + 2 * tm * D * (x_it + out_it)    # x/out tiles, double-buffered
            + tm * H * (4 + w_it))            # (tm, H) hidden f32 + cast copy


# ---------------------------------------------------------------------------
# Public API
# ---------------------------------------------------------------------------

def prepare_mlp_weights(w_fc, w_proj, compute_dtype=jnp.bfloat16):
    """One-time prep: torch layout [out, in] -> [in, out], cast to compute dtype.

    w_fc:   (4D, D) torch c_fc.weight   -> w1: (D, 4D)
    w_proj: (D, 4D) torch c_proj.weight -> w2: (4D, D)
    """
    w1 = jnp.asarray(w_fc).T.astype(compute_dtype)
    w2 = jnp.asarray(w_proj).T.astype(compute_dtype)
    return w1, w2


@functools.partial(jax.jit, static_argnames=("mode", "tile_m", "tile_h"))
def mlp_forward(x, w1, w2, *, mode="auto", tile_m=None, tile_h=None):
    """x: (..., D); w1: (D, 4D); w2: (4D, D) prepared via prepare_mlp_weights.

    mode: "auto" (pick weight-resident when it fits VMEM), "resident", "streamed".
    """
    D = x.shape[-1]
    H = w1.shape[1]
    assert w1.shape == (D, H) and w2.shape == (H, D)
    lead = x.shape[:-1]
    N = 1
    for s in lead:
        N *= s

    compute_dtype = w1.dtype
    out_dtype = x.dtype
    x_it = jnp.dtype(compute_dtype).itemsize
    w_it = jnp.dtype(compute_dtype).itemsize
    o_it = jnp.dtype(out_dtype).itemsize

    # Per-chip defaults: the main generation fork is VMEM capacity.
    vmem_cap = _vmem_capacity_bytes()
    if vmem_cap >= 100 * _MIB:          # 128 MiB parts (v5e / v6e)
        default_tm, default_th, vmem_limit = 1024, 1024, 100 * _MIB
    else:                               # 64 MiB per-TC parts (v7x)
        default_tm, default_th, vmem_limit = 768, 512, 52 * _MIB
    fit_budget = vmem_limit - 6 * _MIB  # headroom for Mosaic internal scratch

    # ---- path selection ----------------------------------------------------
    tm_res = _pick_tm(N, min(512, default_tm) if tile_m is None else tile_m)
    resident_fits = _resident_vmem_bytes(tm_res, D, H, x_it, w_it, o_it) <= fit_budget
    use_resident = (mode == "resident") or (mode == "auto" and resident_fits)

    if use_resident:
        tm = tm_res
        th = H
    else:
        tm = _pick_tm(N, default_tm if tile_m is None else tile_m)
        th = _pick_th(H, default_th if tile_h is None else tile_h)
        while (_streamed_vmem_bytes(tm, th, D, x_it, w_it, o_it) > fit_budget
               and tm > 256):
            tm = max(256, tm - 256)
        while (_streamed_vmem_bytes(tm, th, D, x_it, w_it, o_it) > fit_budget
               and th > 128 and th % 2 == 0 and H % (th // 2) == 0):
            th //= 2

    n_pad = pl.cdiv(N, tm) * tm
    num_i = n_pad // tm

    # Cast + pad (fused by XLA under jit).  Padded rows are zeros; relu(0)^2 @ W
    # = 0, so they are harmless and sliced off below.
    x2 = x.reshape(N, D)
    xp = x2.astype(compute_dtype) if x2.dtype != compute_dtype else x2
    if n_pad != N:
        xp = jnp.pad(xp, ((0, n_pad - N), (0, 0)))

    flops = 4 * n_pad * D * H           # two matmuls, 2*N*D*H flops each
    act_bytes = n_pad * D * (x_it + o_it)
    w_bytes = 2 * D * H * w_it

    if use_resident:
        vmem_space = _vmem_memory_space()
        out = pl.pallas_call(
            _mlp_resident_kernel,
            out_shape=jax.ShapeDtypeStruct((n_pad, D), out_dtype),
            grid_spec=pltpu.PrefetchScalarGridSpec(
                num_scalar_prefetch=0,
                grid=(num_i,),
                in_specs=[
                    pl.BlockSpec((tm, D), lambda i: (i, 0)),      # x tile
                    pl.BlockSpec(memory_space=vmem_space),        # whole W1 (DMA once)
                    pl.BlockSpec(memory_space=vmem_space),        # whole W2 (DMA once)
                ],
                out_specs=pl.BlockSpec((tm, D), lambda i: (i, 0)),
            ),
            compiler_params=pltpu.CompilerParams(
                dimension_semantics=("parallel",),
                vmem_limit_bytes=vmem_limit,
            ),
            cost_estimate=pl.CostEstimate(
                flops=flops, transcendentals=0,
                bytes_accessed=act_bytes + w_bytes),              # weights once
        )(xp, w1, w2)
    else:
        out = pl.pallas_call(
            _mlp_streamed_kernel,
            out_shape=jax.ShapeDtypeStruct((n_pad, D), out_dtype),
            grid_spec=pltpu.PrefetchScalarGridSpec(
                num_scalar_prefetch=0,
                grid=(num_i, H // th),
                in_specs=[
                    pl.BlockSpec((tm, D), lambda i, h: (i, 0)),   # x tile (reused over h)
                    pl.BlockSpec((D, th), lambda i, h: (0, h)),   # c_fc slice
                    pl.BlockSpec((th, D), lambda i, h: (h, 0)),   # c_proj slice
                ],
                out_specs=pl.BlockSpec((tm, D), lambda i, h: (i, 0)),
                scratch_shapes=[pltpu.VMEM((tm, D), jnp.float32)],
            ),
            compiler_params=pltpu.CompilerParams(
                dimension_semantics=("parallel", "arbitrary"),
                vmem_limit_bytes=vmem_limit,
            ),
            cost_estimate=pl.CostEstimate(
                flops=flops, transcendentals=0,
                bytes_accessed=act_bytes + num_i * w_bytes),      # weights re-streamed
        )(xp, w1, w2)

    if n_pad != N:
        out = out[:N]
    return out.reshape(lead + (D,))


def init_mlp_params(key, dim, num_layers):
    """Deterministic init matching the PyTorch module (shapes + distributions)."""
    k_fc, k_proj = jax.random.split(key)
    # CastedLinear.reset_parameters: uniform(-bound, bound), bound = sqrt(3)*0.5*dim^-0.5
    std_fc = 0.5 * dim ** (-0.5)
    bound = (3.0 ** 0.5) * std_fc
    w_fc = jax.random.uniform(k_fc, (4 * dim, dim), jnp.float32,
                              minval=-bound, maxval=bound)
    # Wang init for c_proj: normal(0, 2 / (num_layers * sqrt(dim)))
    std_proj = 2.0 / (num_layers * dim ** 0.5)
    w_proj = jax.random.normal(k_proj, (dim, 4 * dim), jnp.float32) * std_proj
    return w_fc, w_proj


if __name__ == "__main__":
    dim = 32            # H = 4*dim = 128 -> one lane-width hidden tile
    num_layers = 4
    batch, seq = 2, 8

    key = jax.random.PRNGKey(0)
    kx, kp = jax.random.split(key)
    x = jax.random.normal(kx, (batch, seq, dim), jnp.float32)
    w_fc, w_proj = init_mlp_params(kp, dim, num_layers)

    # One-time weight prep: torch [out, in] -> [in, out], cast to bf16.
    w1, w2 = prepare_mlp_weights(w_fc, w_proj, compute_dtype=jnp.bfloat16)

    # Reference: same math as the PyTorch forward (weights cast to activation
    # dtype -> bf16 matmuls, f32 accumulation like the kernel).
    x_flat = x.reshape(batch * seq, dim)
    xb = x_flat.astype(jnp.bfloat16)
    h_ref = jnp.maximum(jnp.dot(xb, w1, preferred_element_type=jnp.float32), 0.0) ** 2
    ref = jnp.dot(h_ref.astype(jnp.bfloat16), w2,
                  preferred_element_type=jnp.float32).astype(x.dtype)

    # 1) auto path (weight-resident at this size).
    out_auto = jax.block_until_ready(mlp_forward(x, w1, w2))
    # 2) forced streamed path (exercises the H-tiled accumulator kernel).
    out_str = jax.block_until_ready(mlp_forward(x, w1, w2, mode="streamed"))
    # 3) remainder-N path (token count not a multiple of the tile -> padding).
    n_rag = 13
    out_rag = jax.block_until_ready(mlp_forward(x_flat[:n_rag], w1, w2))

    assert out_auto.shape == x.shape
    assert jnp.allclose(out_auto.reshape(-1, dim), ref, atol=2e-2, rtol=2e-2), \
        "auto (weight-resident) path mismatch vs reference"
    assert jnp.allclose(out_str.reshape(-1, dim), ref, atol=2e-2, rtol=2e-2), \
        "streamed path mismatch vs reference"
    assert jnp.allclose(out_rag, ref[:n_rag], atol=2e-2, rtol=2e-2), \
        "remainder-N path mismatch vs reference"
    print("KERNEL_OK")
</pallas_src>

<mosaic_0001>
module attributes {stable_mosaic.version = 11 : i64} {
  func.func @_mlp_resident_kernel(%arg0: i32, %arg1: memref<16x32xbf16, #tpu.memory_space<vmem>>, %arg2: memref<32x128xbf16, #tpu.memory_space<vmem>>, %arg3: memref<128x32xbf16, #tpu.memory_space<vmem>>, %arg4: memref<16x32xf32, #tpu.memory_space<vmem>>) attributes {dimension_semantics = [#tpu.dimension_semantics<parallel>], iteration_bounds = array<i64: 1>, scalar_prefetch = 0 : i64, scratch_operands = 0 : i64, tpu.core_type = #tpu.core_type<tc>, window_params = [{transform_indices = @transform_0, window_bounds = array<i64: 16, 32>}, {pipeline_mode = #tpu.pipeline_mode<synchronous>, transform_indices = @transform_1, window_bounds = array<i64: 32, 128>}, {pipeline_mode = #tpu.pipeline_mode<synchronous>, transform_indices = @transform_2, window_bounds = array<i64: 128, 32>}, {transform_indices = @transform_3, window_bounds = array<i64: 16, 32>}]} {
    %c0 = arith.constant 0 : index
    %c0_0 = arith.constant 0 : index
    %0 = vector.load %arg1[%c0, %c0_0] : memref<16x32xbf16, #tpu.memory_space<vmem>>, vector<16x32xbf16>
    %c0_1 = arith.constant 0 : index
    %c0_2 = arith.constant 0 : index
    %1 = vector.load %arg2[%c0_1, %c0_2] : memref<32x128xbf16, #tpu.memory_space<vmem>>, vector<32x128xbf16>
    %cst = arith.constant dense<0.000000e+00> : vector<16x128xf32>
    %2 = tpu.matmul %0, %1, %cst {dimension_numbers = #tpu.dot_dimension_numbers<[1], [0], [0], [1], [0, 0, 1, 1], [], []>} : vector<16x32xbf16>, vector<32x128xbf16>, vector<16x128xf32> -> vector<16x128xf32>
    %cst_3 = arith.constant 0.000000e+00 : f32
    %3 = vector.broadcast %cst_3 : f32 to vector<16x128xf32>
    %4 = arith.maximumf %2, %3 : vector<16x128xf32>
    %5 = arith.mulf %4, %4 : vector<16x128xf32>
    %6 = arith.truncf %5 : vector<16x128xf32> to vector<16x128xbf16>
    %c0_4 = arith.constant 0 : index
    %c0_5 = arith.constant 0 : index
    %7 = vector.load %arg3[%c0_4, %c0_5] : memref<128x32xbf16, #tpu.memory_space<vmem>>, vector<128x32xbf16>
    %cst_6 = arith.constant dense<0.000000e+00> : vector<16x32xf32>
    %8 = tpu.matmul %6, %7, %cst_6 {dimension_numbers = #tpu.dot_dimension_numbers<[1], [0], [0], [1], [0, 0, 1, 1], [], []>} : vector<16x128xbf16>, vector<128x32xbf16>, vector<16x32xf32> -> vector<16x32xf32>
    %c0_7 = arith.constant 0 : index
    %c0_8 = arith.constant 0 : index
    %9 = vector.load %arg4[%c0_7, %c0_8] : memref<16x32xf32, #tpu.memory_space<vmem>>, vector<16x32xf32>
    tpu.vector_store %arg4[%c0_7, %c0_8], %8 {strides = array<i32>} : memref<16x32xf32, #tpu.memory_space<vmem>>, vector<16x32xf32>,
    return
  }
  func.func @transform_0(%arg0: i32) -> (i32, i32) {
    %c0_i32 = arith.constant 0 : i32
    %c0_i32_0 = arith.constant 0 : i32
    return %arg0, %c0_i32 : i32, i32
  }
  func.func @transform_1(%arg0: i32) -> (i32, i32) {
    %c0_i32 = arith.constant 0 : i32
    %c0_i32_0 = arith.constant 0 : i32
    %c0_i32_1 = arith.constant 0 : i32
    return %c0_i32, %c0_i32_0 : i32, i32
  }
  func.func @transform_2(%arg0: i32) -> (i32, i32) {
    %c0_i32 = arith.constant 0 : i32
    %c0_i32_0 = arith.constant 0 : i32
    %c0_i32_1 = arith.constant 0 : i32
    return %c0_i32, %c0_i32_0 : i32, i32
  }
  func.func @transform_3(%arg0: i32) -> (i32, i32) {
    %c0_i32 = arith.constant 0 : i32
    %c0_i32_0 = arith.constant 0 : i32
    return %arg0, %c0_i32 : i32, i32
  }
}

</mosaic_0001>

<bundles_post_ra>
// kernel: mlp_forward.1
= control target key start
LH: loop header
LB: loop body
LE: loop exit
PB: predicated region body
PF: predicated region fallthrough
CT: control target
= control target key end

     0   :  { %s307_s0 = inlined_call_operand.vmem [shape: bf16[16,32], index: 0, kind: input, shape index: {}]   ;;  %s308_s1 = inlined_call_operand.vmem [shape: bf16[32,128], index: 1, kind: input, shape index: {}]   ;;  %s309_s2 = inlined_call_operand.vmem [shape: bf16[128,32], index: 2, kind: input, shape index: {}]   ;;  %s310_s3 = inlined_call_operand.hbm [shape: f32[16,32], index: 3, kind: output, shape index: {}]  }
   0x1   :  { %v207_v0 = vld [vmem:[%s308_s1 + $0x8] sm:$0xff]  ;;  %v215_v1 = vld [vmem:[%s309_s2 + $0x38] sm:$0xff]  ;;  %v206_v2 = vld [vmem:[%s308_s1] sm:$0xff] }
   0x2   :  { %49 = vmatpush.bf16.msra.mxu0 %v207_v0 }
   0x3   :  { %8 = vsyncpa [#allocation3], 0  ;;  %126 = vmatpush.bf16.msra.mxu1 %v215_v1  ;;  %v214_v3 = vld [vmem:[%s309_s2 + $0x30] sm:$0xff]  ;;  %v205_v4 = vld [vmem:[%s307_s0] sm:$0xff]  ;;  %vm39_vm0 = vcmask 261120   ;;  %s245_s5 = smov [#allocation2]  }
   0x4   :  { %v213_v5 = vld [vmem:[%s309_s2 + $0x28] sm:$0xff]  ;;  %v212_v6 = vld [vmem:[%s309_s2 + $0x20] sm:$0xff]  ;;  %v211_v7 = vld [vmem:[%s309_s2 + $0x18] sm:$0xff]  ;;  %s146_s6 = sshll.u32 %s245_s5, 4  ;;  %s148_s9 = sshll.u32 %s310_s3, 4  ;;  %s147_s6 = int_to_ptr.vmem [resolvable:$true] %s146_s6  ;;  %s149_s9 = int_to_ptr.hbm [resolvable:$true] %s148_s9 }
   0x5   :  { %v210_v8 = vld [vmem:[%s309_s2 + $0x10] sm:$0xff]  ;;  %v209_v9 = vld [vmem:[%s309_s2 + $0x8] sm:$0xff]  ;;  %v208_v10 = vld [vmem:[%s309_s2] sm:$0xff]  ;;  %s246_s2 = smov 128   ;;  %s247_s10 = smov 8  }
   0x6   :  { %50 = vmatpush.bf16.msra.mxu0 %v206_v2 }
   0x7   :  { %127 = vmatpush.bf16.msra.mxu1 %v214_v3 }
   0x9   :  { %172 = vmatmul.msk.bf16.vlgmr.msra.gmra.mxu0 %vm39_vm0, %v205_v4 }
   0xb   :  { %128 = vmatpush.bf16.msra.mxu1 %v213_v5 }
   0xf   :  { %129 = vmatpush.bf16.msra.mxu1 %v212_v6 }
  0x13   :  { %130 = vmatpush.bf16.msra.mxu1 %v211_v7 }
  0x17   :  { %131 = vmatpush.bf16.msra.mxu1 %v210_v8 }
  0x1b   :  { %132 = vmatpush.bf16.msra.mxu1 %v209_v9 }
  0x1f   :  { %133 = vmatpush.bf16.msra.mxu1 %v208_v10 }
  0x86   :  { %v52_v11 = vpop.f32.mrf.mxu0 }
  0x87   :  { %v57_v12 = vmax.f32 %v52_v11, 0.0 }
  0x89   :  { %v59_v15 = vmul.f32 %v57_v12, %v57_v12 }
  0x8e   :  { %v54_v13 = vpop.f32.mrf.mxu0 }
  0x8f   :  { %v58_v14 = vmax.f32 %v54_v13, 0.0 }
  0x91   :  { %v60_v16 = vmul.f32 %v58_v14, %v58_v14 }
  0x93   :  { %v61_v17 = vpack.c.bf16 %v60_v16, %v59_v15 }
  0x95   :  { %134 = vmatmul.bf16.vlgmr.msra.gmra.mxu1 %v61_v17 }
 0x112   :  { %v135_v18 = vpop.f32.mrf.mxu1 }
 0x113   :  { %140 = vst.msk [vmem:[#allocation2] sm:$0xff] %vm39_vm0, %v135_v18 }
 0x11a   :  { %v137_v19 = vpop.f32.mrf.mxu1 }
 0x11b   :  { %141 = vst.msk [vmem:[#allocation2 + $0x8] sm:$0xff] %vm39_vm0, %v137_v19 }
 0x11c   :  { %154 = dma.vmem_to_hbm [thread:$0]  %s147_s6, 256, %s149_s9, [#allocation3], %s246_s2, %s246_s2, %s247_s10  }
 0x11d   :  { %243 = dma.done.wait [#allocation3], 256  }
 0x11e   :  { %244 = vsyncadd [#allocation3], 4294967040 }
 0x11f   :  { %159 = vsyncpa [#allocation3], 1 }

</bundles_post_ra>
